<compile_context>
chip_gen: v7x
topology: tpu7x:2x2x1
jax: 0.10.0
libtpu: 0.0.40
codegen_flags: <defaults>
</compile_context>

<pallas_src>
import jax
import jax.numpy as jnp
from jax.experimental import pallas as pl
from jax.experimental.pallas import tpu as pltpu


def _round_up(v, m):
    return -(-v // m) * m


def _step_vmem_bytes(bb, Lp, d_in, d_h, n_head, x_bytes, mm_bytes):
    """Rough per-grid-step VMEM footprint: double-buffered tiles + intermediates."""
    r8 = lambda v: _round_up(max(v, 1), 8)
    r128 = lambda v: _round_up(max(v, 1), 128)
    tiles = 2 * bb * (r8(Lp) * r128(d_in) * x_bytes        # x input tile
                      + 8 * r128(Lp) * 4                   # mask bias tile
                      + r8(n_head) * r128(Lp) * 4          # attn output tile
                      + r8(n_head) * r128(d_in) * x_bytes)  # pooled output tile
    weights = 2 * (r8(d_in) + r8(n_head)) * r128(d_h) * 4
    # in-kernel intermediates: cast copy of x, f32 h, per-head temporaries
    interm = bb * r8(Lp) * (r128(d_in) * mm_bytes + 2 * r128(d_h) * 4)
    return tiles + weights + interm


def _choose_block_b(B, Lp, d_in, d_h, n_head, x_bytes, mm_bytes, budget):
    """Largest batch tile (divisor of B) within the VMEM budget, keeping
    block_b*L in the ~512-2048 row sweet spot and >=2 grid steps when possible."""
    target_rows = 2048
    best = 1
    for bb in sorted((d for d in range(1, B + 1) if B % d == 0), reverse=True):
        if bb > 1 and bb * Lp > target_rows:
            continue
        if _step_vmem_bytes(bb, Lp, d_in, d_h, n_head, x_bytes, mm_bytes) <= budget:
            best = bb
            break
    # prefer >=2 grid steps (pipelining + both v7x TensorCores) unless the tile
    # would drop below ~256 rows
    while (B // best < 2 and best > 1 and B % (best // 2) == 0
           and (best // 2) * Lp >= 256):
        best //= 2
    return best


def mha_kernel(x_ref, bias_ref, w1t_ref, w2t_ref, out_ref, attn_ref):
    bt, Lp, d_in = x_ref.shape
    n_head, d_h = w2t_ref.shape
    f32 = jnp.float32

    x = x_ref[...]                               # (bt, Lp, d_in), caller dtype
    xc = x.astype(w1t_ref.dtype)                 # MXU operand dtype (bf16 or f32)

    # ---- projection 1 (MXU): h = tanh(x @ W1.T), f32 accumulation -------------
    # Lp % 8 == 0 (wrapper pads), so these leading-dim reshapes are pure views.
    h = jnp.tanh(
        jnp.dot(xc.reshape(bt * Lp, d_in), w1t_ref[...],
                preferred_element_type=f32)
    ).reshape(bt, Lp, d_h)                       # (bt, Lp, d_h), f32

    # Additive pad-mask bias: 0 for valid, -1e30 for padded. L on lanes.
    bias = bias_ref[...][:, 0, :]                # (bt, Lp)
    w2t = w2t_ref[...].astype(f32)               # (n_head, d_h), VPU operand

    # ---- projection 2 + softmax, per head, lane-dense in L ---------------------
    # n_head is tiny: an MXU matmul would use n_head of 128/256 result columns,
    # so do a VPU broadcast-multiply + lane reduce instead. This also produces
    # the scores with L on the lane axis, so max/exp/sum run at full lane width
    # and the attn store is lane-dense, with no in-kernel transpose.
    for hh in range(n_head):                     # static unroll, n_head small
        w_row = w2t[hh:hh + 1, :][None]          # (1, 1, d_h)
        s_h = jnp.sum(h * w_row, axis=-1) + bias  # (bt, Lp), f32 scores
        s_max = jnp.max(s_h, axis=-1, keepdims=True)
        e = jnp.exp(s_h - s_max)
        denom = jnp.sum(e, axis=-1, keepdims=True)
        r = pl.reciprocal(denom, approx=True)    # EUP slot (essentially free)
        r = r * (2.0 - denom * r)                # Newton step 1
        r = r * (2.0 - denom * r)                # Newton step 2 -> full f32
        a_h = e * r                              # (bt, Lp)
        attn_ref[:, hh:hh + 1, :] = a_h[:, None, :].astype(attn_ref.dtype)

    # ---- pooled output: bmm(attn^T, x), batched contraction over L -------------
    # (flash-attention PV pattern; lhs lane dim contracts with rhs sublane dim)
    # TODO(synk): for very small n_head a VPU weighted-sum could avoid the tiny
    # per-batch MXU matmuls, but it requires an attn relayout (L lanes->sublanes).
    a = attn_ref[...]                            # (bt, n_head, Lp), f32
    pooled = jax.lax.dot_general(
        a.astype(xc.dtype), xc,
        dimension_numbers=(((2,), (1,)), ((0,), (0,))),
        preferred_element_type=f32)              # (bt, n_head, d_in)
    out_ref[...] = pooled.astype(out_ref.dtype)


def mha_forward(x, pad_mask, w1t, w2, *, matmul_dtype=jnp.bfloat16,
                block_b=None, vmem_budget_bytes=24 * 1024 * 1024):
    """Pallas forward. pad_mask: (B, L), nonzero == padded position, or None."""
    B, L, d_in = x.shape
    d_in_w, d_h = w1t.shape
    d_h2, n_head = w2.shape
    assert d_in_w == d_in and d_h2 == d_h

    # Pad L up to a multiple of 8 so in-kernel leading-dim reshapes stay views.
    Lp = _round_up(L, 8)
    x_p = x if Lp == L else jnp.pad(x, ((0, 0), (0, Lp - L), (0, 0)))

    # Additive mask bias, lane-dense in L: (B, 1, Lp); padded L positions masked.
    # TODO(synk): fully-masked rows give uniform attention (finite -1e30 bias)
    # instead of PyTorch's NaNs from the literal -inf masked_fill.
    NEG = jnp.float32(-1e30)
    if pad_mask is None:
        valid = jnp.ones((B, L), dtype=bool)
    else:
        valid = (pad_mask == 0)
    if Lp != L:
        valid = jnp.pad(valid, ((0, 0), (0, Lp - L)), constant_values=False)
    bias = jnp.where(valid, jnp.float32(0.0), NEG)[:, None, :]     # (B, 1, Lp)

    w1t_c = w1t.astype(matmul_dtype)             # MXU operand
    w2t = jnp.asarray(w2.T, jnp.float32)         # (n_head, d_h), VPU operand

    x_bytes = jnp.dtype(x.dtype).itemsize
    mm_bytes = jnp.dtype(matmul_dtype).itemsize
    if block_b is None:
        block_b = _choose_block_b(B, Lp, d_in, d_h, n_head,
                                  x_bytes, mm_bytes, vmem_budget_bytes)
    assert B % block_b == 0, "B must be divisible by the batch tile"
    grid = (B // block_b,)

    est = _step_vmem_bytes(block_b, Lp, d_in, d_h, n_head, x_bytes, mm_bytes)
    vmem_limit = int(min(100 * 2**20, max(32 * 2**20, 2 * est)))

    out, attn_t = pl.pallas_call(
        mha_kernel,
        out_shape=(
            jax.ShapeDtypeStruct((B, n_head, d_in), x.dtype),    # pooled output
            jax.ShapeDtypeStruct((B, n_head, Lp), jnp.float32),  # attn (L on lanes)
        ),
        grid=grid,
        in_specs=[
            pl.BlockSpec((block_b, Lp, d_in), lambda b: (b, 0, 0)),   # x
            pl.BlockSpec((block_b, 1, Lp), lambda b: (b, 0, 0)),      # mask bias
            pl.BlockSpec((d_in, d_h), lambda b: (0, 0)),              # w1t
            pl.BlockSpec((n_head, d_h), lambda b: (0, 0)),            # w2.T
        ],
        out_specs=(
            pl.BlockSpec((block_b, n_head, d_in), lambda b: (b, 0, 0)),
            pl.BlockSpec((block_b, n_head, Lp), lambda b: (b, 0, 0)),
        ),
        compiler_params=pltpu.CompilerParams(
            dimension_semantics=("parallel",),
            vmem_limit_bytes=vmem_limit,
        ),
    )(x_p, bias, w1t_c, w2t)

    # Back to the PyTorch attn layout (B, L, n_head); drop any L padding.
    attn = jnp.swapaxes(attn_t, 1, 2)[:, :L, :]
    if n_head == 1:                              # PyTorch: output.squeeze(1)
        out = out[:, 0, :]
    return out, attn


def mha_reference(x, pad_mask, w1t, w2, matmul_dtype=jnp.float32):
    """Pure-JAX reference mirroring the PyTorch forward (and the kernel's casts)."""
    cdt = matmul_dtype
    h = jnp.tanh(jnp.einsum('bld,dk->blk', x.astype(cdt), w1t.astype(cdt),
                            preferred_element_type=jnp.float32))
    s = jnp.einsum('blk,kh->blh', h, w2.astype(jnp.float32),
                   preferred_element_type=jnp.float32)
    if pad_mask is not None:
        s = jnp.where(pad_mask[:, :, None] != 0, jnp.float32(-1e30), s)
    attn = jax.nn.softmax(s, axis=1)
    out = jnp.einsum('blh,bld->bhd', attn.astype(cdt), x.astype(cdt),
                     preferred_element_type=jnp.float32).astype(x.dtype)
    if out.shape[1] == 1:
        out = out[:, 0, :]
    return out, attn


def xavier_uniform(key, fan_in, fan_out):
    bound = (6.0 / (fan_in + fan_out)) ** 0.5
    # generated directly in (fan_in, fan_out) "transposed" math layout
    return jax.random.uniform(key, (fan_in, fan_out), jnp.float32, -bound, bound)


if __name__ == "__main__":
    # MultiHeadSelfAttention(n_head=2, d_in=32, d_hidden=32)
    B, L = 2, 8
    n_head, d_in, d_h = 2, 32, 32

    key = jax.random.PRNGKey(0)
    k_x, k1, k2 = jax.random.split(key, 3)

    x = jax.random.normal(k_x, (B, L, d_in), jnp.float32)
    # pad last 2 positions of each sequence (nonzero = padded -> masked)
    pad_mask = jnp.concatenate(
        [jnp.zeros((B, L - 2), jnp.int32), jnp.ones((B, 2), jnp.int32)], axis=1)

    # Deterministic xavier-uniform-style parameter init (synthetic, no checkpoint)
    w1t = xavier_uniform(k1, d_in, d_h)      # w_1.weight.T
    w2 = xavier_uniform(k2, d_h, n_head)     # w_2.weight.T

    # ---- exact f32 path ----------------------------------------------------
    out32, attn32 = jax.block_until_ready(
        mha_forward(x, pad_mask, w1t, w2, matmul_dtype=jnp.float32))
    r_out32, r_attn32 = mha_reference(x, pad_mask, w1t, w2,
                                      matmul_dtype=jnp.float32)
    assert out32.shape == (B, n_head, d_in)
    assert attn32.shape == (B, L, n_head)
    assert jnp.allclose(attn32, r_attn32, atol=1e-5, rtol=1e-4)
    assert jnp.allclose(out32, r_out32, atol=1e-5, rtol=1e-4)

    # ---- performance path: bf16 MXU operands, f32 softmax/accumulation -----
    out16, attn16 = jax.block_until_ready(
        mha_forward(x, pad_mask, w1t, w2, matmul_dtype=jnp.bfloat16))
    r_out16, r_attn16 = mha_reference(x, pad_mask, w1t, w2,
                                      matmul_dtype=jnp.bfloat16)
    assert jnp.allclose(attn16, r_attn16, atol=1e-3, rtol=1e-2)
    assert jnp.allclose(out16, r_out16, atol=1e-3, rtol=1e-2)
    # bf16 matmul path stays close to the exact-f32 result as well
    assert jnp.allclose(attn16, r_attn32, atol=3e-2, rtol=3e-2)

    print("KERNEL_OK")
</pallas_src>

<mosaic_0001>
module attributes {stable_mosaic.version = 11 : i64} {
  func.func @mha_kernel(%arg0: i32, %arg1: memref<2x8x32xf32, #tpu.memory_space<vmem>>, %arg2: memref<2x1x8xf32, #tpu.memory_space<vmem>>, %arg3: memref<32x32xf32, #tpu.memory_space<vmem>>, %arg4: memref<2x32xf32, #tpu.memory_space<vmem>>, %arg5: memref<2x2x32xf32, #tpu.memory_space<vmem>>, %arg6: memref<2x2x8xf32, #tpu.memory_space<vmem>>) attributes {dimension_semantics = [#tpu.dimension_semantics<parallel>], iteration_bounds = array<i64: 1>, scalar_prefetch = 0 : i64, scratch_operands = 0 : i64, tpu.core_type = #tpu.core_type<tc>, window_params = [{transform_indices = @transform_0, window_bounds = array<i64: 2, 8, 32>}, {transform_indices = @transform_1, window_bounds = array<i64: 2, 1, 8>}, {pipeline_mode = #tpu.pipeline_mode<synchronous>, transform_indices = @transform_2, window_bounds = array<i64: 32, 32>}, {pipeline_mode = #tpu.pipeline_mode<synchronous>, transform_indices = @transform_3, window_bounds = array<i64: 2, 32>}, {transform_indices = @transform_4, window_bounds = array<i64: 2, 2, 32>}, {transform_indices = @transform_5, window_bounds = array<i64: 2, 2, 8>}]} {
    %c0 = arith.constant 0 : index
    %c0_0 = arith.constant 0 : index
    %c0_1 = arith.constant 0 : index
    %0 = vector.load %arg1[%c0, %c0_0, %c0_1] : memref<2x8x32xf32, #tpu.memory_space<vmem>>, vector<2x8x32xf32>
    %1 = vector.shape_cast %0 : vector<2x8x32xf32> to vector<16x32xf32>
    %c0_2 = arith.constant 0 : index
    %c0_3 = arith.constant 0 : index
    %2 = vector.load %arg3[%c0_2, %c0_3] : memref<32x32xf32, #tpu.memory_space<vmem>>, vector<32x32xf32>
    %cst = arith.constant dense<0.000000e+00> : vector<16x32xf32>
    %3 = tpu.matmul %1, %2, %cst {dimension_numbers = #tpu.dot_dimension_numbers<[1], [0], [0], [1], [0, 0, 1, 1], [], []>} : vector<16x32xf32>, vector<32x32xf32>, vector<16x32xf32> -> vector<16x32xf32>
    %4 = math.tanh %3 : vector<16x32xf32>
    %5 = vector.shape_cast %4 : vector<16x32xf32> to vector<2x8x32xf32>
    %c0_4 = arith.constant 0 : index
    %c0_5 = arith.constant 0 : index
    %c0_6 = arith.constant 0 : index
    %6 = vector.load %arg2[%c0_4, %c0_5, %c0_6] : memref<2x1x8xf32, #tpu.memory_space<vmem>>, vector<2x1x8xf32>
    %7 = vector.shape_cast %6 : vector<2x1x8xf32> to vector<2x8xf32>
    %c0_7 = arith.constant 0 : index
    %c0_8 = arith.constant 0 : index
    %8 = vector.load %arg4[%c0_7, %c0_8] : memref<2x32xf32, #tpu.memory_space<vmem>>, vector<2x32xf32>
    %9 = vector.extract_strided_slice %8 {offsets = [0, 0], sizes = [1, 32], strides = [1, 1]} : vector<2x32xf32> to vector<1x32xf32>
    %10 = vector.shape_cast %9 : vector<1x32xf32> to vector<1x1x32xf32>
    %11 = vector.broadcast %10 : vector<1x1x32xf32> to vector<2x8x32xf32>
    %12 = arith.mulf %5, %11 : vector<2x8x32xf32>
    %cst_9 = arith.constant dense<0.000000e+00> : vector<2x8xf32>
    %13 = vector.multi_reduction <add>, %12, %cst_9 [2] : vector<2x8x32xf32> to vector<2x8xf32>
    %14 = arith.addf %13, %7 : vector<2x8xf32>
    %cst_10 = arith.constant dense<0xFF800000> : vector<2xf32>
    %15 = vector.multi_reduction <maximumf>, %14, %cst_10 [1] : vector<2x8xf32> to vector<2xf32>
    %16 = vector.shape_cast %15 : vector<2xf32> to vector<2x1xf32>
    %17 = vector.broadcast %16 : vector<2x1xf32> to vector<2x8xf32>
    %18 = arith.subf %14, %17 : vector<2x8xf32>
    %19 = math.exp %18 : vector<2x8xf32>
    %cst_11 = arith.constant dense<0.000000e+00> : vector<2xf32>
    %20 = vector.multi_reduction <add>, %19, %cst_11 [1] : vector<2x8xf32> to vector<2xf32>
    %21 = vector.shape_cast %20 : vector<2xf32> to vector<2x1xf32>
    %22 = tpu.reciprocal %21 {approx = true} : vector<2x1xf32> -> vector<2x1xf32>
    %23 = arith.mulf %21, %22 : vector<2x1xf32>
    %cst_12 = arith.constant 2.000000e+00 : f32
    %24 = vector.broadcast %cst_12 : f32 to vector<2x1xf32>
    %25 = arith.subf %24, %23 : vector<2x1xf32>
    %26 = arith.mulf %22, %25 : vector<2x1xf32>
    %27 = arith.mulf %21, %26 : vector<2x1xf32>
    %cst_13 = arith.constant 2.000000e+00 : f32
    %28 = vector.broadcast %cst_13 : f32 to vector<2x1xf32>
    %29 = arith.subf %28, %27 : vector<2x1xf32>
    %30 = arith.mulf %26, %29 : vector<2x1xf32>
    %31 = vector.broadcast %30 : vector<2x1xf32> to vector<2x8xf32>
    %32 = arith.mulf %19, %31 : vector<2x8xf32>
    %33 = vector.shape_cast %32 : vector<2x8xf32> to vector<2x1x8xf32>
    %c0_14 = arith.constant 0 : index
    %c0_15 = arith.constant 0 : index
    %c0_16 = arith.constant 0 : index
    %34 = vector.load %arg6[%c0_14, %c0_15, %c0_16] : memref<2x2x8xf32, #tpu.memory_space<vmem>>, vector<2x1x8xf32>
    tpu.vector_store %arg6[%c0_14, %c0_15, %c0_16], %33 {strides = array<i32>} : memref<2x2x8xf32, #tpu.memory_space<vmem>>, vector<2x1x8xf32>,
    %35 = vector.extract_strided_slice %8 {offsets = [1, 0], sizes = [1, 32], strides = [1, 1]} : vector<2x32xf32> to vector<1x32xf32>
    %36 = vector.shape_cast %35 : vector<1x32xf32> to vector<1x1x32xf32>
    %37 = vector.broadcast %36 : vector<1x1x32xf32> to vector<2x8x32xf32>
    %38 = arith.mulf %5, %37 : vector<2x8x32xf32>
    %cst_17 = arith.constant dense<0.000000e+00> : vector<2x8xf32>
    %39 = vector.multi_reduction <add>, %38, %cst_17 [2] : vector<2x8x32xf32> to vector<2x8xf32>
    %40 = arith.addf %39, %7 : vector<2x8xf32>
    %cst_18 = arith.constant dense<0xFF800000> : vector<2xf32>
    %41 = vector.multi_reduction <maximumf>, %40, %cst_18 [1] : vector<2x8xf32> to vector<2xf32>
    %42 = vector.shape_cast %41 : vector<2xf32> to vector<2x1xf32>
    %43 = vector.broadcast %42 : vector<2x1xf32> to vector<2x8xf32>
    %44 = arith.subf %40, %43 : vector<2x8xf32>
    %45 = math.exp %44 : vector<2x8xf32>
    %cst_19 = arith.constant dense<0.000000e+00> : vector<2xf32>
    %46 = vector.multi_reduction <add>, %45, %cst_19 [1] : vector<2x8xf32> to vector<2xf32>
    %47 = vector.shape_cast %46 : vector<2xf32> to vector<2x1xf32>
    %48 = tpu.reciprocal %47 {approx = true} : vector<2x1xf32> -> vector<2x1xf32>
    %49 = arith.mulf %47, %48 : vector<2x1xf32>
    %cst_20 = arith.constant 2.000000e+00 : f32
    %50 = vector.broadcast %cst_20 : f32 to vector<2x1xf32>
    %51 = arith.subf %50, %49 : vector<2x1xf32>
    %52 = arith.mulf %48, %51 : vector<2x1xf32>
    %53 = arith.mulf %47, %52 : vector<2x1xf32>
    %cst_21 = arith.constant 2.000000e+00 : f32
    %54 = vector.broadcast %cst_21 : f32 to vector<2x1xf32>
    %55 = arith.subf %54, %53 : vector<2x1xf32>
    %56 = arith.mulf %52, %55 : vector<2x1xf32>
    %57 = vector.broadcast %56 : vector<2x1xf32> to vector<2x8xf32>
    %58 = arith.mulf %45, %57 : vector<2x8xf32>
    %59 = vector.shape_cast %58 : vector<2x8xf32> to vector<2x1x8xf32>
    %c0_22 = arith.constant 0 : index
    %c1 = arith.constant 1 : index
    %c0_23 = arith.constant 0 : index
    %60 = vector.load %arg6[%c0_22, %c1, %c0_23] : memref<2x2x8xf32, #tpu.memory_space<vmem>>, vector<2x1x8xf32>
    tpu.vector_store %arg6[%c0_22, %c1, %c0_23], %59 {strides = array<i32>} : memref<2x2x8xf32, #tpu.memory_space<vmem>>, vector<2x1x8xf32>,
    %c0_24 = arith.constant 0 : index
    %c0_25 = arith.constant 0 : index
    %c0_26 = arith.constant 0 : index
    %61 = vector.load %arg6[%c0_24, %c0_25, %c0_26] : memref<2x2x8xf32, #tpu.memory_space<vmem>>, vector<2x2x8xf32>
    %cst_27 = arith.constant dense<0.000000e+00> : vector<2x2x32xf32>
    %62 = tpu.matmul %61, %0, %cst_27 {dimension_numbers = #tpu.dot_dimension_numbers<[2], [1], [1], [2], [0, 0, 0, 1, 1, 2], [0], [0]>} : vector<2x2x8xf32>, vector<2x8x32xf32>, vector<2x2x32xf32> -> vector<2x2x32xf32>
    %c0_28 = arith.constant 0 : index
    %c0_29 = arith.constant 0 : index
    %c0_30 = arith.constant 0 : index
    %63 = vector.load %arg5[%c0_28, %c0_29, %c0_30] : memref<2x2x32xf32, #tpu.memory_space<vmem>>, vector<2x2x32xf32>
    tpu.vector_store %arg5[%c0_28, %c0_29, %c0_30], %62 {strides = array<i32>} : memref<2x2x32xf32, #tpu.memory_space<vmem>>, vector<2x2x32xf32>,
    return
  }
  func.func @transform_0(%arg0: i32) -> (i32, i32, i32) {
    %c0_i32 = arith.constant 0 : i32
    %c0_i32_0 = arith.constant 0 : i32
    %c0_i32_1 = arith.constant 0 : i32
    return %arg0, %c0_i32, %c0_i32_0 : i32, i32, i32
  }
  func.func @transform_1(%arg0: i32) -> (i32, i32, i32) {
    %c0_i32 = arith.constant 0 : i32
    %c0_i32_0 = arith.constant 0 : i32
    %c0_i32_1 = arith.constant 0 : i32
    return %arg0, %c0_i32, %c0_i32_0 : i32, i32, i32
  }
  func.func @transform_2(%arg0: i32) -> (i32, i32) {
    %c0_i32 = arith.constant 0 : i32
    %c0_i32_0 = arith.constant 0 : i32
    %c0_i32_1 = arith.constant 0 : i32
    return %c0_i32, %c0_i32_0 : i32, i32
  }
  func.func @transform_3(%arg0: i32) -> (i32, i32) {
    %c0_i32 = arith.constant 0 : i32
    %c0_i32_0 = arith.constant 0 : i32
    %c0_i32_1 = arith.constant 0 : i32
    return %c0_i32, %c0_i32_0 : i32, i32
  }
  func.func @transform_4(%arg0: i32) -> (i32, i32, i32) {
    %c0_i32 = arith.constant 0 : i32
    %c0_i32_0 = arith.constant 0 : i32
    %c0_i32_1 = arith.constant 0 : i32
    return %arg0, %c0_i32, %c0_i32_0 : i32, i32, i32
  }
  func.func @transform_5(%arg0: i32) -> (i32, i32, i32) {
    %c0_i32 = arith.constant 0 : i32
    %c0_i32_0 = arith.constant 0 : i32
    %c0_i32_1 = arith.constant 0 : i32
    return %arg0, %c0_i32, %c0_i32_0 : i32, i32, i32
  }
}

</mosaic_0001>

<bundles_post_ra>
// kernel: tpu_custom_call.1
= control target key start
LH: loop header
LB: loop body
LE: loop exit
PB: predicated region body
PF: predicated region fallthrough
CT: control target
= control target key end

     0   :  { %11 = vsyncpa [#allocation3], 0  ;;  %s897_s0 = inlined_call_operand.hbm [shape: f32[2,8,32], index: 0, kind: input, shape index: {}]   ;;  %s898_s1 = inlined_call_operand.vmem [shape: f32[2,1,8], index: 1, kind: input, shape index: {}]   ;;  %s899_s2 = inlined_call_operand.hbm [shape: f32[32,32], index: 2, kind: input, shape index: {}]   ;;  %s900_s3 = inlined_call_operand.vmem [shape: f32[2,32], index: 3, kind: input, shape index: {}]   ;;  %s901_s4 = inlined_call_operand.hbm [shape: f32[2,2,32], index: 4, kind: output, shape index: {0}]   ;;  %s902_s5 = inlined_call_operand.hbm [shape: f32[2,2,8], index: 5, kind: output, shape index: {1}]  }
   0x1   :  { %12 = vsyncpa [#allocation6], 0 }
   0x2   :  { %13 = vsyncpa [#allocation4], 0 }
   0x3   :  { %14 = vsyncpa [#allocation9], 0  ;;  %s747_s18 = smov [#allocation2]   ;;  %s651_s22 = scalar_lea.hbm %s897_s0, 256 }
   0x4   :  { %s20_s19 = sshll.u32 %s747_s18, 4  ;;  %p652_p0 = scmp.ne.s32.totalorder %s897_s0, %s651_s22  ;;  %s21_s19 = int_to_ptr.vmem [resolvable:$true] %s20_s19 }
   0x5   :  { %p655_p1 = scmp.lt.u32.totalorder %s651_s22, %s897_s0 }
   0x7   :  { %p657_p2 = pnand %p655_p1, %p652_p0 }
   0x9   :  { %660 = shalt.err (!%p657_p2)
}
   0xa   :  { %s661_s27 = scalar_lea.vmem %s21_s19, 256  ;;  %p666_p4 = scmp.lt.s32.totalorder %s21_s19, %s21_s19 }
   0xb   :  { %p662_p3 = scmp.ne.s32.totalorder %s21_s19, %s661_s27  ;;  %p667_p5 = scmp.lt.s32.totalorder %s661_s27, %s661_s27 }
   0xd   :  { %p668_p6 = por %p667_p5, %p666_p4 }
   0xf   :  { %p669_p7 = pnand %p668_p6, %p662_p3 }
  0x11   :  { %672 = shalt.err (!%p669_p7)
}
  0x12   :  { %s748_s28 = smov 128   ;;  %s749_s29 = smov 8  }
  0x13   :  { %26 = dma.hbm_to_vmem [thread:$0]  %s897_s0, 256, %s21_s19, [#allocation3], %s748_s28, %s748_s28, %s749_s29  }
  0x14   :  { %s750_s7 = smov [#allocation5]   ;;  %s673_s11 = scalar_lea.hbm %s899_s2, 512 }
  0x15   :  { %s34_s8 = sshll.u32 %s750_s7, 4  ;;  %p674_p8 = scmp.ne.s32.totalorder %s899_s2, %s673_s11  ;;  %s35_s8 = int_to_ptr.vmem [resolvable:$true] %s34_s8 }
  0x16   :  { %p677_p9 = scmp.lt.u32.totalorder %s673_s11, %s899_s2 }
  0x18   :  { %p679_p10 = pnand %p677_p9, %p674_p8 }
  0x1a   :  { %682 = shalt.err (!%p679_p10)
}
  0x1b   :  { %s683_s16 = scalar_lea.vmem %s35_s8, 512  ;;  %p688_p12 = scmp.lt.s32.totalorder %s35_s8, %s35_s8 }
  0x1c   :  { %p684_p11 = scmp.ne.s32.totalorder %s35_s8, %s683_s16  ;;  %p689_p13 = scmp.lt.s32.totalorder %s683_s16, %s683_s16 }
  0x1e   :  { %p690_p0 = por %p689_p13, %p688_p12 }
  0x20   :  { %p691_p1 = pnand %p690_p0, %p684_p11 }
  0x22   :  { %694 = shalt.err (!%p691_p1)
}
  0x23   :  { %40 = dma.hbm_to_vmem [thread:$0]  %s899_s2, 512, %s35_s8, [#allocation6], %s748_s28, %s748_s28, %s749_s29  }
  0x24   :  { %739 = dma.done.wait [#allocation3], 256  }
  0x25   :  { %740 = vsyncadd [#allocation3], 4294967040 }
  0x26   :  { %741 = dma.done.wait [#allocation6], 512  }
  0x27   :  { %742 = vsyncadd [#allocation6], 4294966784  ;;  %vm55_vm0 = vcmask 261120   ;;  %v51_v0 = vld [vmem:[#allocation5] sm:$0xff]  ;;  %v52_v1 = vld [vmem:[#allocation5 + $0x8] sm:$0xff]  ;;  %v142_v8 = vlaneseq  ;;  %v751_v31 = vmov 0  }
  0x28   :  { %v53_v2 = vld [vmem:[#allocation5 + $0x10] sm:$0xff]  ;;  %v614_v3 = vpack.c.bf16 %v52_v1, %v51_v0  ;;  %v54_v4 = vld [vmem:[#allocation5 + $0x18] sm:$0xff]  ;;  %634 = vset.pattern.permute.xlu0 %v751_v31  ;;  %633 = vset.pattern.permute.xlu1 %v751_v31  ;;  %vm192_vm1 = vcmask 1041409   ;;  %vm195_vm2 = vcmask 58368   ;;  %vm753_vm3 = vmmov 0  }
  0x29   :  { %v812_v5 = vld [vmem:[#allocation2] sm:$0xff]  ;;  %v618_v6 = vpack.c.bf16 %v54_v4, %v53_v2  ;;  %v816_v7 = vld [vmem:[#allocation2 + $0x8] sm:$0xff]  ;;  %v143_v9 = vshrl.u32 %v142_v8, 7  ;;  %v183_v10 = vand.u32 127, %v142_v8  ;;  %vm275_vm4 = vcmask 57344  }
  0x2a   :  { %601 = vmatprep.mubr.msk.f32.mxu0 %vm55_vm0, %v812_v5  ;;  %615 = vmatprep.subr.bf16.mxu0 %v614_v3  ;;  %v141_v16 = vld [vmem:[%s900_s3] sm:$0x3]  ;;  %vm393_vm5 = vcmask 64512  }
  0x2b   :  { %617 = vmatpush3.bf16.msra.mxu0 %v614_v3  ;;  %v820_v11 = vsub.s32 %v183_v10, %v143_v9  ;;  %v822_v14 = vsub.s32 1, %v143_v9  ;;  %v824_v15 = vsub.s32 0, %v143_v9  ;;  %v580_v29 = vld [vmem:[%s898_s1 + $0x1] ss:$0 sm:$0xff]  ;;  %v579_v30 = vld [vmem:[%s898_s1] ss:$0 sm:$0xff] }
  0x2c   :  { %619 = vmatprep.subr.bf16.mxu0 %v618_v6  ;;  %s754_s1 = smov [#allocation8]  }
  0x2d   :  { %v281_v17 = vrot.slane %v141_v16, %v822_v14  ;;  %v145_v18 = vrot.slane %v141_v16, %v824_v15  ;;  %s560_s22 = sshll.u32 %s754_s1, 4  ;;  %s561_s22 = int_to_ptr.vmem [resolvable:$true] %s560_s22 }
  0x2e   :  { %s695_s23 = scalar_lea.vmem %s561_s22, 64  ;;  %p700_p3 = scmp.lt.s32.totalorder %s561_s22, %s561_s22 }
  0x2f   :  { %621 = vmatpush3.bf16.msra.mxu0 %v618_v6  ;;  %p696_p2 = scmp.ne.s32.totalorder %s561_s22, %s695_s23  ;;  %p701_p4 = scmp.lt.s32.totalorder %s695_s23, %s695_s23 }
  0x31   :  { %p702_p5 = por %p701_p4, %p700_p3 }
  0x32   :  { %602 = vmatmul.mubr.msk.f32.vlgmr.msra.gmra.mrb[0].mxu0 %vm55_vm0, %v816_v7 }
  0x33   :  { %p703_p6 = pnand %p702_p5, %p696_p2 }
 0x105   :  { %v603_v12 = vpop.f32.mrb[0].mxu0 }
 0x106   :  { %635 = vtanh.f32 %v603_v12  ;;  %v128_v13 = vpop.f32.mrb[1].mxu0 }
 0x107   :  { %637 = vtanh.f32 %v128_v13 }
 0x110   :  { %v636_v19 = vpop.eup %635 }
 0x111   :  { %v638_v20 = vpop.eup %637  ;;  %v283_v21 = vmul.f32 %v636_v19, %v281_v17  ;;  %v147_v22 = vmul.f32 %v636_v19, %v145_v18 }
 0x112   :  { %v282_v25 = vmul.f32 %v638_v20, %v281_v17  ;;  %v146_v26 = vmul.f32 %v638_v20, %v145_v18 }
 0x113   :  { %v287_v23 = vsel %vm55_vm0, %v283_v21, 0.0  ;;  %v151_v24 = vsel %vm55_vm0, %v147_v22, 0.0 }
 0x114   :  { %288 = vadd.xlane.f32.xlu1 %v287_v23  ;;  %152 = vadd.xlane.f32.xlu0 %v151_v24  ;;  %v284_v27 = vsel %vm55_vm0, %v282_v25, 0.0  ;;  %v148_v28 = vsel %vm55_vm0, %v146_v26, 0.0 }
 0x118   :  { %285 = vadd.xlane.f32.xlu1 %v284_v27  ;;  %149 = vadd.xlane.f32.xlu0 %v148_v28 }
 0x129   :  { %168 = vbcast.lane.b32.xlu1 %v580_v29, 256 }
 0x12e   :  { %165 = vbcast.lane.b32.xlu0 %v579_v30, 256 }
 0x1a1   :  { %v289_v32 = vpop.xlane.xlu1 %288  ;;  %v153_v33 = vpop.xlane.xlu0 %152 }
 0x1a5   :  { %v286_v34 = vpop.xlane.xlu1 %285  ;;  %v150_v35 = vpop.xlane.xlu0 %149 }
 0x1a9   :  { %v169_v36 = vpop.permute.xlu1 %168  ;;  %v166_v37 = vpop.permute.xlu0 %165 }
 0x1aa   :  { %v173_v38 = vadd.f32 %v169_v36, %v153_v33  ;;  %v290_v39 = vadd.f32 %v286_v34, %v166_v37  ;;  %v172_v40 = vadd.f32 %v166_v37, %v150_v35  ;;  %v291_v41 = vadd.f32 %v289_v32, %v169_v36 }
 0x1ac   :  { %180 = vperm.xlu1 %633, %v173_v38   ;;  %295 = vperm.xlu0 %634, %v290_v39  }
 0x1b0   :  { %177 = vperm.xlu1 %633, %v172_v40  }
 0x1b4   :  { %298 = vperm.xlu1 %633, %v291_v41  }
 0x22b   :  { %v181_v42 = vpop.permute.xlu1 %180  ;;  %v296_v46 = vpop.permute.xlu0 %295 }
 0x22c   :  { %v191_v44 = vrot.slane %v181_v42, %v820_v11  ;;  %v303_v50 = vrot.slane %v296_v46, %v820_v11 }
 0x22f   :  { %v178_v43 = vpop.permute.xlu1 %177 }
 0x230   :  { %v187_v45 = vrot.slane %v178_v43, %v820_v11 }
 0x232   :  { %v193_v47 = vsel %vm192_vm1, %v191_v44, %v187_v45 }
 0x233   :  { %v299_v48 = vpop.permute.xlu1 %298  ;;  %v196_v49 = vsel %vm195_vm2, %v193_v47, -inf }
 0x234   :  { %v307_v51 = vrot.slane %v299_v48, %v820_v11  ;;  %197 = vmax.xlane.f32.xlu1 %v196_v49  ;;  %v752_v49 = vmov 0.0  }
 0x235   :  { %604 = vmatprep.subr.mxu1 %v752_v49  ;;  %606 = vmatprep.mubr.msk.f32.mxu1 %vm753_vm3, %v752_v49 }
 0x236   :  { %v308_v52 = vsel %vm192_vm1, %v307_v51, %v303_v50  ;;  %605 = vmatpush3.msra.mxu1 %v812_v5 }
 0x237   :  { %v310_v53 = vsel %vm195_vm2, %v308_v52, -inf  ;;  %609 = vmatprep.subr.mxu1 %v752_v49 }
 0x238   :  { %311 = vmax.xlane.f32.xlu0 %v310_v53 }
 0x2c1   :  { %v198_v54 = vpop.xlane.xlu1 %197 }
 0x2c2   :  { %v203_v55 = vrot.slane %v198_v54, %v824_v15  ;;  %v207_v56 = vrot.slane %v198_v54, %v822_v14 }
 0x2c4   :  { %v210_v57 = vsub.f32 %v172_v40, %v203_v55  ;;  %v211_v58 = vsub.f32 %v173_v38, %v207_v56 }
 0x2c5   :  { %v312_v59 = vpop.xlane.xlu0 %311 }
 0x2c6   :  { %v212_v60 = vmul.f32 1.442695, %v210_v57  ;;  %v214_v61 = vmul.f32 1.442695, %v211_v58  ;;  %v317_v62 = vrot.slane %v312_v59, %v824_v15  ;;  %v321_v63 = vrot.slane %v312_v59, %v822_v14 }
 0x2c8   :  { %639 = vpow2.f32 %v212_v60  ;;  %v324_v0 = vsub.f32 %v290_v39, %v317_v62  ;;  %v325_v1 = vsub.f32 %v291_v41, %v321_v63 }
 0x2c9   :  { %641 = vpow2.f32 %v214_v61 }
 0x2ca   :  { %v326_v2 = vmul.f32 1.442695, %v324_v0  ;;  %v328_v3 = vmul.f32 1.442695, %v325_v1 }
 0x2cc   :  { %643 = vpow2.f32 %v326_v2 }
 0x2cd   :  { %645 = vpow2.f32 %v328_v3 }
 0x2d2   :  { %v640_v4 = vpop.eup %639 }
 0x2d3   :  { %v642_v6 = vpop.eup %641  ;;  %219 = vperm.xlu0 %634, %v640_v4  }
 0x2d4   :  { %222 = vperm.xlu1 %633, %v642_v6  }
 0x2d6   :  { %v644_v8 = vpop.eup %643 }
 0x2d7   :  { %v646_v9 = vpop.eup %645 }
 0x2d8   :  { %336 = vperm.xlu0 %634, %v646_v9   ;;  %333 = vperm.xlu1 %633, %v644_v8  }
 0x352   :  { %v220_v10 = vpop.permute.xlu0 %219 }
 0x353   :  { %v223_v12 = vpop.permute.xlu1 %222  ;;  %v227_v13 = vrot.slane %v220_v10, %v820_v11 }
 0x354   :  { %v231_v16 = vrot.slane %v223_v12, %v820_v11 }
 0x356   :  { %v232_v17 = vsel %vm192_vm1, %v231_v16, %v227_v13 }
 0x357   :  { %v334_v18 = vpop.permute.xlu1 %333  ;;  %v337_v19 = vpop.permute.xlu0 %336  ;;  %v234_v20 = vsel %vm195_vm2, %v232_v17, 0.0 }
 0x358   :  { %v341_v21 = vrot.slane %v334_v18, %v820_v11  ;;  %v345_v22 = vrot.slane %v337_v19, %v820_v11  ;;  %235 = vadd.xlane.f32.xlu1 %v234_v20 }
 0x35a   :  { %v346_v23 = vsel %vm192_vm1, %v345_v22, %v341_v21 }
 0x35b   :  { %v348_v24 = vsel %vm195_vm2, %v346_v23, 0.0 }
 0x35c   :  { %349 = vadd.xlane.f32.xlu0 %v348_v24 }
 0x3e5   :  { %v236_v25 = vpop.xlane.xlu1 %235 }
 0x3e6   :  { %647 = vrcp.f32 %v236_v25 }
 0x3e9   :  { %v350_v26 = vpop.xlane.xlu0 %349 }
 0x3ea   :  { %649 = vrcp.f32 %v350_v26 }
 0x3f0   :  { %v648_v27 = vpop.eup %647 }
 0x3f1   :  { %v238_v28 = vmul.f32 %v648_v27, %v236_v25 }
 0x3f3   :  { %v239_v29 = vsub.f32 2.0, %v238_v28 }
 0x3f4   :  { %v650_v30 = vpop.eup %649 }
 0x3f5   :  { %v240_v31 = vmul.f32 %v648_v27, %v239_v29  ;;  %v352_v32 = vmul.f32 %v650_v30, %v350_v26 }
 0x3f7   :  { %v241_v33 = vmul.f32 %v240_v31, %v236_v25  ;;  %v353_v34 = vsub.f32 2.0, %v352_v32 }
 0x3f9   :  { %v242_v35 = vsub.f32 2.0, %v241_v33  ;;  %v354_v36 = vmul.f32 %v650_v30, %v353_v34 }
 0x3fb   :  { %v243_v37 = vmul.f32 %v242_v35, %v240_v31  ;;  %v355_v38 = vmul.f32 %v354_v36, %v350_v26 }
 0x3fd   :  { %v356_v39 = vsub.f32 2.0, %v355_v38  ;;  %v248_v40 = vrot.slane %v243_v37, %v824_v15  ;;  %v252_v47 = vrot.slane %v243_v37, %v822_v14 }
 0x3ff   :  { %v357_v41 = vmul.f32 %v356_v39, %v354_v36  ;;  %v255_v42 = vmul.f32 %v640_v4, %v248_v40  ;;  %v256_v48 = vmul.f32 %v642_v6, %v252_v47 }
 0x401   :  { %260 = vperm.xlu0 %634, %v255_v42   ;;  %v366_v43 = vrot.slane %v357_v41, %v822_v14  ;;  %v362_v44 = vrot.slane %v357_v41, %v824_v15 }
 0x403   :  { %v370_v45 = vmul.f32 %v646_v9, %v366_v43  ;;  %v369_v46 = vmul.f32 %v644_v8, %v362_v44 }
 0x405   :  { %377 = vperm.xlu0 %634, %v370_v45   ;;  %374 = vperm.xlu1 %633, %v369_v46  }
 0x409   :  { %263 = vperm.xlu1 %633, %v256_v48  }
 0x480   :  { %v261_v50 = vpop.permute.xlu0 %260 }
 0x481   :  { %v268_v15 = vrot.slane %v261_v50, %v820_v11 }
 0x483   :  { %276 = vst.msk [vmem:[#allocation8] sm:$0x1] %vm275_vm4, %v268_v15 }
 0x484   :  { %v375_v51 = vpop.permute.xlu1 %374  ;;  %v378_v52 = vpop.permute.xlu0 %377 }
 0x485   :  { %v382_v14 = vrot.slane %v375_v51, %v820_v11  ;;  %v386_v53 = vrot.slane %v378_v52, %v820_v11 }
 0x487   :  { %389 = vst.msk [vmem:[#allocation8 + $0x1] sm:$0x1] %vm275_vm4, %v382_v14  ;;  %390 = vst.msk [vmem:[#allocation8 + $0x3] sm:$0x1] %vm275_vm4, %v386_v53 }
 0x488   :  { %v264_v54 = vpop.permute.xlu1 %263 }
 0x489   :  { %v272_v55 = vrot.slane %v264_v54, %v820_v11 }
 0x48b   :  { %277 = vst.msk [vmem:[#allocation8 + $0x2] sm:$0x1] %vm275_vm4, %v272_v55 }
 0x48e   :  { %v391_v5 = vld [vmem:[#allocation8] sm:$0x3] }
 0x48f   :  { %607 = vmatmul.mubr.msk.f32.vlgmr.msra.gmra.mrb[0].mxu1 %vm393_vm5, %v391_v5 }
 0x490   :  { %610 = vmatpush3.msra.mxu1 %v816_v7  ;;  %611 = vmatprep.mubr.msk.f32.mxu1 %vm753_vm3, %v752_v49 }
 0x492   :  { %v392_v56 = vld [vmem:[#allocation8 + $0x2] sm:$0x3] }
 0x493   :  { %612 = vmatmul.mubr.msk.f32.vlgmr.msra.gmra.mrb[2].mxu1 %vm393_vm5, %v392_v56 }
 0x494   :  { %706 = shalt.err (!%p703_p6)
}
 0x495   :  { %s707_s26 = scalar_lea.hbm %s902_s5, 64 }
 0x496   :  { %p708_p7 = scmp.ne.s32.totalorder %s902_s5, %s707_s26  ;;  %p711_p8 = scmp.lt.u32.totalorder %s707_s26, %s902_s5 }
 0x498   :  { %p713_p9 = pnand %p711_p8, %p708_p7 }
 0x49a   :  { %716 = shalt.err (!%p713_p9)
}
 0x49b   :  { %s755_s6 = smov 32   ;;  %s756_s7 = smov 2   ;;  %vm540_vm6 = vcmask 254976  }
 0x49c   :  { %566 = dma.vmem_to_hbm [thread:$0]  %s561_s22, 64, %s902_s5, [#allocation9], %s755_s6, %s755_s6, %s756_s7  }
 0x49d   :  { %s757_s10 = smov [#allocation7]  }
 0x49e   :  { %s548_s11 = sshll.u32 %s757_s10, 4  ;;  %s549_s11 = int_to_ptr.vmem [resolvable:$true] %s548_s11 }
 0x49f   :  { %s717_s12 = scalar_lea.vmem %s549_s11, 64  ;;  %p722_p11 = scmp.lt.s32.totalorder %s549_s11, %s549_s11 }
 0x4a0   :  { %p718_p10 = scmp.ne.s32.totalorder %s549_s11, %s717_s12  ;;  %p723_p12 = scmp.lt.s32.totalorder %s717_s12, %s717_s12 }
 0x4a2   :  { %p724_p13 = por %p723_p12, %p722_p11 }
 0x4a4   :  { %p725_p0 = pnand %p724_p13, %p718_p10 }
 0x562   :  { %v463_v7 = vpop.f32.mrb[0].mxu1 }
 0x563   :  { %541 = vst.msk [vmem:[#allocation7] sm:$0x3] %vm540_vm6, %v463_v7  ;;  %v608_v11 = vpop.f32.mrb[1].mxu1 }
 0x566   :  { %v536_v57 = vpop.f32.mrb[2].mxu1 }
 0x567   :  { %542 = vst.msk [vmem:[#allocation7 + $0x2] sm:$0x3] %vm540_vm6, %v536_v57  ;;  %v613_v58 = vpop.f32.mrb[3].mxu1 }
 0x568   :  { %728 = shalt.err (!%p725_p0)
}
 0x569   :  { %s729_s5 = scalar_lea.hbm %s901_s4, 64 }
 0x56a   :  { %p730_p1 = scmp.ne.s32.totalorder %s901_s4, %s729_s5  ;;  %p733_p2 = scmp.lt.u32.totalorder %s729_s5, %s901_s4 }
 0x56c   :  { %p735_p3 = pnand %p733_p2, %p730_p1 }
 0x56e   :  { %738 = shalt.err (!%p735_p3)
}
 0x56f   :  { %554 = dma.vmem_to_hbm [thread:$0]  %s549_s11, 64, %s901_s4, [#allocation4], %s755_s6, %s755_s6, %s756_s7  }
 0x570   :  { %743 = dma.done.wait [#allocation4], 64  }
 0x571   :  { %744 = vsyncadd [#allocation4], 4294967232 }
 0x572   :  { %745 = dma.done.wait [#allocation9], 64  }
 0x573   :  { %746 = vsyncadd [#allocation9], 4294967232 }
 0x574   :  { %573 = vsyncpa [#allocation3], 1 }
 0x575   :  { %574 = vsyncpa [#allocation6], 1 }
 0x576   :  { %575 = vsyncpa [#allocation4], 1 }
 0x577   :  { %576 = vsyncpa [#allocation9], 1 }

</bundles_post_ra>
